<compile_context>
chip_gen: v5e
topology: v5e:2x2
jax: 0.10.0
libtpu: 0.0.40
codegen_flags: <defaults>
</compile_context>

<pallas_src>
import functools

import jax
import jax.numpy as jnp
from jax import lax
from jax.experimental import pallas as pl
from jax.experimental.pallas import tpu as pltpu


def _mix32(h):
    """lowbias32-style avalanche mix on uint32 lanes (pure VPU ops)."""
    h = h ^ (h >> jnp.uint32(16))
    h = h * jnp.uint32(0x7FEB352D)
    h = h ^ (h >> jnp.uint32(15))
    h = h * jnp.uint32(0x846CA68B)
    h = h ^ (h >> jnp.uint32(16))
    return h


def _dropout_kernel(seed_ref, x_ref, o_ref, *, threshold31, scale, tile_rows):
    """Dropout on one lane-dense tile [tile_rows, width]."""
    shape = x_ref.shape
    width = shape[1]
    pid = pl.program_id(0)

    seed_u32 = seed_ref[0].astype(jnp.uint32)

    # Split hash: the expensive mixes run on tiny (rows,1) / (1,width) vectors;
    # per-element cost is one broadcast add + one _mix32 (~9 VPU ops), vs ~25
    # before.  Mask depends only on (global_row, col, seed) -> grid-invariant.
    row_ids = (lax.broadcasted_iota(jnp.int32, (shape[0], 1), 0)
               + pid * tile_rows).astype(jnp.uint32)
    col_ids = lax.broadcasted_iota(jnp.int32, (1, width), 1).astype(jnp.uint32)
    row_h = _mix32(row_ids * jnp.uint32(0x9E3779B9) + seed_u32)
    col_h = _mix32(col_ids * jnp.uint32(0x85EBCA6B)
                   + (seed_u32 ^ jnp.uint32(0x5BD1E995)))
    bits = _mix32(row_h + col_h)

    # Compare top 31 bits against an integer threshold; P(drop) ~= p.
    bits31 = (bits >> jnp.uint32(1)).astype(jnp.int32)
    keep = bits31 >= jnp.int32(threshold31)

    x = x_ref[...]
    # Conscious choice: scale is rounded to the input dtype (no f32 upcast ->
    # no extra VALU/vreg pressure for bf16); tiny systematic bias acceptable
    # for MC dropout.
    scaled = x * jnp.asarray(scale, dtype=x.dtype)
    o_ref[...] = jnp.where(keep, scaled, jnp.zeros((), dtype=x.dtype)).astype(o_ref.dtype)


def dropout_for_mc(x, p, seed, dropout_flag=True, *, target_tile_bytes=2 * 1024 * 1024):
    """Pallas equivalent of DropoutForMC.forward (dropout even in eval)."""
    p = float(p)
    if p < 0.0 or p > 1.0:
        raise ValueError(f"dropout probability must be in [0, 1], got {p}")
    if (not dropout_flag) or p == 0.0:
        return x
    if p == 1.0:
        return jnp.zeros_like(x)
    if x.size == 0:
        return x

    orig_shape = x.shape
    total = x.size
    hidden = orig_shape[-1] if x.ndim >= 1 else 1

    # Lane-dense 2D layout WITHOUT any pad/copy passes (reshape is free):
    #  * native last dim when it's already a multiple of 128,
    #  * else the widest W in {1024,512,256,128} dividing the element count,
    #  * else fall back to the native last dim (masked edge stores, but no
    #    extra HBM traffic).
    if hidden >= 128 and hidden % 128 == 0:
        width = hidden
    else:
        width = None
        for cand in (1024, 512, 256, 128):
            if total % cand == 0:
                width = cand
                break
        if width is None:
            width = max(hidden, 1)
    x2 = x.reshape(-1, width)
    rows = x2.shape[0]

    # Row-tile sizing: ~target_tile_bytes per block; BlockSpec double-buffers
    # input + output (~4x tile), safely under the default scoped-VMEM limit
    # on v5e/v6e/v7x.  tile_rows rounded to the dtype's sublane packing.
    itemsize = x2.dtype.itemsize
    sublane = max(8, 32 // max(1, itemsize))       # f32:8, bf16:16, int8/fp8:32
    bytes_per_row = max(1, width * itemsize)
    tile_rows = max(1, target_tile_bytes // bytes_per_row)
    if tile_rows >= rows:
        tile_rows = rows                            # single full block is legal
    else:
        tile_rows = max(sublane, (tile_rows // sublane) * sublane)
    grid_rows = pl.cdiv(rows, tile_rows)            # edge block masked by Pallas

    threshold31 = min(max(int(round(p * (1 << 31))), 0), (1 << 31) - 1)
    scale = 1.0 / (1.0 - p)
    seed_arr = jnp.asarray([int(seed) & 0x7FFFFFFF], dtype=jnp.int32)

    kernel = functools.partial(_dropout_kernel, threshold31=threshold31,
                               scale=scale, tile_rows=tile_rows)

    out2 = pl.pallas_call(
        kernel,
        out_shape=jax.ShapeDtypeStruct((rows, width), x2.dtype),
        grid_spec=pltpu.PrefetchScalarGridSpec(
            num_scalar_prefetch=1,
            grid=(grid_rows,),
            in_specs=[pl.BlockSpec((tile_rows, width), lambda i, seed: (i, 0))],
            out_specs=pl.BlockSpec((tile_rows, width), lambda i, seed: (i, 0)),
        ),
        compiler_params=pltpu.CompilerParams(
            dimension_semantics=("parallel",),       # independent row tiles (v7x 2 TCs)
        ),
    )(seed_arr, x2)

    return out2.reshape(orig_shape)


if __name__ == "__main__":
    key = jax.random.PRNGKey(0)
    # Small activation-shaped tensor: [batch=2, seq=8, hidden=128]
    x = jax.random.normal(key, (2, 8, 128), dtype=jnp.float32)
    p = 0.25

    y = dropout_for_mc(x, p=p, seed=1234, dropout_flag=True)
    y = jax.block_until_ready(y)

    assert y.shape == x.shape and y.dtype == x.dtype
    zero_mask = (y == 0)
    n_zero = int(zero_mask.sum())
    n_total = y.size
    assert 0 < n_zero < n_total                              # some (not all) dropped
    ok = jnp.allclose(jnp.where(zero_mask, 0.0, y),
                      jnp.where(zero_mask, 0.0, x / (1.0 - p)),
                      rtol=1e-5, atol=1e-6)
    assert bool(ok)                                          # survivors scaled by 1/(1-p)
    frac = n_zero / n_total
    assert abs(frac - p) < 0.08, f"drop rate {frac} far from p={p}"

    # Grid-invariance: tiny tiles (grid > 1) must give the same mask.
    y_tiled = dropout_for_mc(x, p=p, seed=1234, dropout_flag=True,
                             target_tile_bytes=4096)
    assert bool(jnp.array_equal(jax.block_until_ready(y_tiled), y))

    # Ragged row count (rows=18, tile=8) exercising the masked edge block.
    x3 = jax.random.normal(jax.random.PRNGKey(1), (2, 9, 128), dtype=jnp.float32)
    y3 = dropout_for_mc(x3, p=p, seed=99, dropout_flag=True, target_tile_bytes=4096)
    y3 = jax.block_until_ready(y3)
    zm3 = (y3 == 0)
    assert y3.shape == x3.shape
    assert bool(jnp.allclose(jnp.where(zm3, 0.0, y3),
                             jnp.where(zm3, 0.0, x3 / (1.0 - p)),
                             rtol=1e-5, atol=1e-6))

    # hidden not a multiple of 128 -> lane-dense flat re-tiling path.
    x4 = jax.random.normal(jax.random.PRNGKey(2), (2, 8, 32), dtype=jnp.float32)
    y4 = jax.block_until_ready(dropout_for_mc(x4, p=p, seed=7, dropout_flag=True))
    zm4 = (y4 == 0)
    assert y4.shape == x4.shape
    assert bool(jnp.allclose(jnp.where(zm4, 0.0, y4),
                             jnp.where(zm4, 0.0, x4 / (1.0 - p)),
                             rtol=1e-5, atol=1e-6))

    # bf16 path (16-row sublane rounding, in-dtype scaling).
    xb = x.astype(jnp.bfloat16)
    yb = jax.block_until_ready(dropout_for_mc(xb, p=p, seed=1234, dropout_flag=True))
    assert yb.shape == xb.shape and yb.dtype == jnp.bfloat16
    zmb = (yb == 0)
    assert bool(jnp.allclose(jnp.where(zmb, 0.0, yb.astype(jnp.float32)),
                             jnp.where(zmb, 0.0, xb.astype(jnp.float32) / (1.0 - p)),
                             rtol=2e-2, atol=1e-3))

    # flag=False and p=0 paths: identity.
    assert bool(jnp.array_equal(dropout_for_mc(x, p=p, seed=1234, dropout_flag=False), x))
    assert bool(jnp.array_equal(dropout_for_mc(x, p=0.0, seed=7, dropout_flag=True), x))

    print("KERNEL_OK")
</pallas_src>

<mosaic_0001>
module attributes {stable_mosaic.version = 11 : i64} {
  func.func @_dropout_kernel(%arg0: i32, %arg1: memref<1xi32, #tpu.memory_space<smem>>, %arg2: memref<16x128xf32, #tpu.memory_space<vmem>>, %arg3: memref<16x128xf32, #tpu.memory_space<vmem>>) attributes {dimension_semantics = [#tpu.dimension_semantics<parallel>], iteration_bounds = array<i64: 1>, scalar_prefetch = 1 : i64, scratch_operands = 0 : i64, tpu.core_type = #tpu.core_type<tc>, window_params = [{transform_indices = @transform_0, window_bounds = array<i64: 16, 128>}, {transform_indices = @transform_1, window_bounds = array<i64: 16, 128>}]} {
    %c0 = arith.constant 0 : index
    %0 = memref.load %arg1[%c0] : memref<1xi32, #tpu.memory_space<smem>>
    %1 = tpu.iota {dimensions = array<i32: 0>} : vector<16x1xi32>
    %c16_i32 = arith.constant 16 : i32
    %2 = arith.muli %arg0, %c16_i32 : i32
    %3 = vector.broadcast %2 : i32 to vector<16x1xi32>
    %4 = arith.addi %1, %3 : vector<16x1xi32>
    %5 = tpu.iota {dimensions = array<i32: 1>} : vector<1x128xi32>
    %c-1640531527_i32 = arith.constant -1640531527 : i32
    %6 = vector.broadcast %c-1640531527_i32 : i32 to vector<16x1xi32>
    %7 = arith.muli %4, %6 : vector<16x1xi32>
    %8 = vector.broadcast %0 : i32 to vector<16x1xi32>
    %9 = arith.addi %7, %8 : vector<16x1xi32>
    %c16_i32_0 = arith.constant 16 : i32
    %10 = vector.broadcast %c16_i32_0 : i32 to vector<16x1xi32>
    %11 = arith.shrui %9, %10 : vector<16x1xi32>
    %12 = arith.xori %9, %11 : vector<16x1xi32>
    %c2146121005_i32 = arith.constant 2146121005 : i32
    %13 = vector.broadcast %c2146121005_i32 : i32 to vector<16x1xi32>
    %14 = arith.muli %12, %13 : vector<16x1xi32>
    %c15_i32 = arith.constant 15 : i32
    %15 = vector.broadcast %c15_i32 : i32 to vector<16x1xi32>
    %16 = arith.shrui %14, %15 : vector<16x1xi32>
    %17 = arith.xori %14, %16 : vector<16x1xi32>
    %c-2073254261_i32 = arith.constant -2073254261 : i32
    %18 = vector.broadcast %c-2073254261_i32 : i32 to vector<16x1xi32>
    %19 = arith.muli %17, %18 : vector<16x1xi32>
    %c16_i32_1 = arith.constant 16 : i32
    %20 = vector.broadcast %c16_i32_1 : i32 to vector<16x1xi32>
    %21 = arith.shrui %19, %20 : vector<16x1xi32>
    %22 = arith.xori %19, %21 : vector<16x1xi32>
    %c-2048144789_i32 = arith.constant -2048144789 : i32
    %23 = vector.broadcast %c-2048144789_i32 : i32 to vector<1x128xi32>
    %24 = arith.muli %5, %23 : vector<1x128xi32>
    %c1540483477_i32 = arith.constant 1540483477 : i32
    %25 = arith.xori %0, %c1540483477_i32 : i32
    %26 = vector.broadcast %25 : i32 to vector<1x128xi32>
    %27 = arith.addi %24, %26 : vector<1x128xi32>
    %c16_i32_2 = arith.constant 16 : i32
    %28 = vector.broadcast %c16_i32_2 : i32 to vector<1x128xi32>
    %29 = arith.shrui %27, %28 : vector<1x128xi32>
    %30 = arith.xori %27, %29 : vector<1x128xi32>
    %c2146121005_i32_3 = arith.constant 2146121005 : i32
    %31 = vector.broadcast %c2146121005_i32_3 : i32 to vector<1x128xi32>
    %32 = arith.muli %30, %31 : vector<1x128xi32>
    %c15_i32_4 = arith.constant 15 : i32
    %33 = vector.broadcast %c15_i32_4 : i32 to vector<1x128xi32>
    %34 = arith.shrui %32, %33 : vector<1x128xi32>
    %35 = arith.xori %32, %34 : vector<1x128xi32>
    %c-2073254261_i32_5 = arith.constant -2073254261 : i32
    %36 = vector.broadcast %c-2073254261_i32_5 : i32 to vector<1x128xi32>
    %37 = arith.muli %35, %36 : vector<1x128xi32>
    %c16_i32_6 = arith.constant 16 : i32
    %38 = vector.broadcast %c16_i32_6 : i32 to vector<1x128xi32>
    %39 = arith.shrui %37, %38 : vector<1x128xi32>
    %40 = arith.xori %37, %39 : vector<1x128xi32>
    %41 = vector.broadcast %22 : vector<16x1xi32> to vector<16x128xi32>
    %42 = vector.broadcast %40 : vector<1x128xi32> to vector<16x128xi32>
    %43 = arith.addi %41, %42 : vector<16x128xi32>
    %c16_i32_7 = arith.constant 16 : i32
    %44 = vector.broadcast %c16_i32_7 : i32 to vector<16x128xi32>
    %45 = arith.shrui %43, %44 : vector<16x128xi32>
    %46 = arith.xori %43, %45 : vector<16x128xi32>
    %c2146121005_i32_8 = arith.constant 2146121005 : i32
    %47 = vector.broadcast %c2146121005_i32_8 : i32 to vector<16x128xi32>
    %48 = arith.muli %46, %47 : vector<16x128xi32>
    %c15_i32_9 = arith.constant 15 : i32
    %49 = vector.broadcast %c15_i32_9 : i32 to vector<16x128xi32>
    %50 = arith.shrui %48, %49 : vector<16x128xi32>
    %51 = arith.xori %48, %50 : vector<16x128xi32>
    %c-2073254261_i32_10 = arith.constant -2073254261 : i32
    %52 = vector.broadcast %c-2073254261_i32_10 : i32 to vector<16x128xi32>
    %53 = arith.muli %51, %52 : vector<16x128xi32>
    %c16_i32_11 = arith.constant 16 : i32
    %54 = vector.broadcast %c16_i32_11 : i32 to vector<16x128xi32>
    %55 = arith.shrui %53, %54 : vector<16x128xi32>
    %56 = arith.xori %53, %55 : vector<16x128xi32>
    %c1_i32 = arith.constant 1 : i32
    %57 = vector.broadcast %c1_i32 : i32 to vector<16x128xi32>
    %58 = arith.shrui %56, %57 : vector<16x128xi32>
    %c536870912_i32 = arith.constant 536870912 : i32
    %59 = vector.broadcast %c536870912_i32 : i32 to vector<16x128xi32>
    %60 = arith.cmpi sge, %58, %59 : vector<16x128xi32>
    %c0_12 = arith.constant 0 : index
    %c0_13 = arith.constant 0 : index
    %61 = vector.load %arg2[%c0_12, %c0_13] : memref<16x128xf32, #tpu.memory_space<vmem>>, vector<16x128xf32>
    %cst = arith.constant 1.33333337 : f32
    %62 = vector.broadcast %cst : f32 to vector<16x128xf32>
    %63 = arith.mulf %61, %62 : vector<16x128xf32>
    %cst_14 = arith.constant 0.000000e+00 : f32
    %64 = vector.broadcast %cst_14 : f32 to vector<16x128xf32>
    %65 = arith.select %60, %63, %64 : vector<16x128xi1>, vector<16x128xf32>
    %c0_15 = arith.constant 0 : index
    %c0_16 = arith.constant 0 : index
    %66 = vector.load %arg3[%c0_15, %c0_16] : memref<16x128xf32, #tpu.memory_space<vmem>>, vector<16x128xf32>
    tpu.vector_store %arg3[%c0_15, %c0_16], %65 {strides = array<i32>} : memref<16x128xf32, #tpu.memory_space<vmem>>, vector<16x128xf32>,
    return
  }
  func.func @transform_0(%arg0: i32, %arg1: memref<1xi32, #tpu.memory_space<smem>>) -> (i32, i32) {
    %c0_i32 = arith.constant 0 : i32
    %c0_i32_0 = arith.constant 0 : i32
    return %arg0, %c0_i32 : i32, i32
  }
  func.func @transform_1(%arg0: i32, %arg1: memref<1xi32, #tpu.memory_space<smem>>) -> (i32, i32) {
    %c0_i32 = arith.constant 0 : i32
    %c0_i32_0 = arith.constant 0 : i32
    return %arg0, %c0_i32 : i32, i32
  }
}

</mosaic_0001>

<bundles_post_ra>
// kernel: tpu_custom_call.1
= control target key start
LH: loop header
LB: loop body
LE: loop exit
PB: predicated region body
PF: predicated region fallthrough
CT: control target
= control target key end

     0   :  { %8 = vsyncpa [#allocation5], 0  ;;  %s212_s0 = inlined_call_operand.<no memory space> [shape: s32[1], index: 0, kind: input, shape index: {}]   ;;  %s213_s1 = inlined_call_operand.hbm [shape: f32[16,128], index: 1, kind: input, shape index: {}]   ;;  %s214_s2 = inlined_call_operand.hbm [shape: f32[16,128], index: 2, kind: output, shape index: {}]  }
   0x1   :  { %9 = vsyncpa [#allocation6], 0  ;;  %s14_s11 = sshll.u32 %s213_s1, 4  ;;  %s175_s12 = smov [#allocation4]   ;;  %s15_s11 = int_to_ptr.hbm [resolvable:$true] %s14_s11 }
   0x2   :  { %s16_s13 = sshll.u32 %s175_s12, 4  ;;  %s176_s14 = smov 128   ;;  %s17_s13 = int_to_ptr.vmem [resolvable:$true] %s16_s13 }
   0x3   :  { %s177_s15 = smov 8  }
   0x4   :  { %22 = dma.hbm_to_vmem [thread:$0]  %s15_s11, 256, %s17_s13, [#allocation5], %s176_s14, %s176_s14, %s177_s15  }
   0x5   :  { %171 = dma.done.wait [#allocation5], 256  }
   0x6   :  { %172 = vsyncadd [#allocation5], 4294967040  ;;  %v28_v0 = vlaneseq  ;;  %s59_s18 = sxor.u32 1540483477, %s212_s0  ;;  %v39_v3 = vstv %s212_s0  ;;  %v92_v50 = vld [vmem:[#allocation4] sm:$0xff]  ;;  %v93_v54 = vld [vmem:[#allocation4 + $0x8] sm:$0xff] }
   0x7   :  { %v60_v4 = vstv %s59_s18  ;;  %v94_v55 = vmul.f32 1.3333334, %v92_v50  ;;  %v95_v58 = vmul.f32 1.3333334, %v93_v54  ;;  %s178_s0 = smov [#allocation7]   ;;  %s106_s23 = sshll.u32 %s214_s2, 4  ;;  %s107_s23 = int_to_ptr.hbm [resolvable:$true] %s106_s23 }
   0x8   :  { %v29_v1 = vshrl.u32 %v28_v0, 7  ;;  %v36_v2 = vand.u32 127, %v28_v0  ;;  %s104_s20 = sshll.u32 %s178_s0, 4  ;;  %s105_s20 = int_to_ptr.vmem [resolvable:$true] %s104_s20 }
   0xa   :  { %v37_v5 = vmul.u32 2654435769, %v29_v1  ;;  %v58_v6 = vmul.u32 2246822507, %v36_v2  ;;  %v30_v7 = vadd.s32 8, %v29_v1 }
   0xc   :  { %v40_v8 = vadd.s32 %v39_v3, %v37_v5  ;;  %v61_v9 = vadd.s32 %v60_v4, %v58_v6  ;;  %v38_v10 = vmul.u32 2654435769, %v30_v7 }
   0xe   :  { %v42_v11 = vshrl.u32 %v40_v8, 16  ;;  %v62_v12 = vshrl.u32 %v61_v9, 16  ;;  %v41_v13 = vadd.s32 %v39_v3, %v38_v10 }
  0x10   :  { %v44_v14 = vxor.u32 %v42_v11, %v40_v8  ;;  %v63_v15 = vxor.u32 %v62_v12, %v61_v9  ;;  %v43_v16 = vshrl.u32 %v41_v13, 16 }
  0x12   :  { %v46_v17 = vmul.u32 2146121005, %v44_v14  ;;  %v64_v18 = vmul.u32 2146121005, %v63_v15  ;;  %v45_v19 = vxor.u32 %v43_v16, %v41_v13 }
  0x14   :  { %v48_v20 = vshrl.u32 %v46_v17, 15  ;;  %v65_v21 = vshrl.u32 %v64_v18, 15  ;;  %v47_v22 = vmul.u32 2146121005, %v45_v19 }
  0x16   :  { %v50_v23 = vxor.u32 %v48_v20, %v46_v17  ;;  %v66_v24 = vxor.u32 %v65_v21, %v64_v18  ;;  %v49_v25 = vshrl.u32 %v47_v22, 15 }
  0x18   :  { %v52_v26 = vmul.u32 2221713035, %v50_v23  ;;  %v67_v27 = vmul.u32 2221713035, %v66_v24  ;;  %v51_v28 = vxor.u32 %v49_v25, %v47_v22 }
  0x1a   :  { %v54_v29 = vshrl.u32 %v52_v26, 16  ;;  %v68_v30 = vshrl.u32 %v67_v27, 16  ;;  %v53_v31 = vmul.u32 2221713035, %v51_v28 }
  0x1c   :  { %v56_v32 = vxor.u32 %v54_v29, %v52_v26  ;;  %v69_v33 = vxor.u32 %v68_v30, %v67_v27  ;;  %v55_v34 = vshrl.u32 %v53_v31, 16 }
  0x1e   :  { %v70_v35 = vadd.s32 %v69_v33, %v56_v32  ;;  %v57_v36 = vxor.u32 %v55_v34, %v53_v31 }
  0x20   :  { %v72_v37 = vshrl.u32 %v70_v35, 16  ;;  %v71_v38 = vadd.s32 %v69_v33, %v57_v36 }
  0x22   :  { %v74_v39 = vxor.u32 %v72_v37, %v70_v35  ;;  %v73_v40 = vshrl.u32 %v71_v38, 16 }
  0x24   :  { %v76_v41 = vmul.u32 2146121005, %v74_v39  ;;  %v75_v42 = vxor.u32 %v73_v40, %v71_v38 }
  0x26   :  { %v78_v43 = vshrl.u32 %v76_v41, 15  ;;  %v77_v44 = vmul.u32 2146121005, %v75_v42 }
  0x28   :  { %v80_v45 = vxor.u32 %v78_v43, %v76_v41  ;;  %v79_v46 = vshrl.u32 %v77_v44, 15 }
  0x2a   :  { %v82_v47 = vmul.u32 2221713035, %v80_v45  ;;  %v81_v48 = vxor.u32 %v79_v46, %v77_v44 }
  0x2c   :  { %v84_v49 = vshrl.u32 %v82_v47, 16  ;;  %v83_v51 = vmul.u32 2221713035, %v81_v48 }
  0x2e   :  { %v86_v52 = vxor.u32 %v84_v49, %v82_v47  ;;  %v85_v53 = vshrl.u32 %v83_v51, 16 }
  0x30   :  { %v88_v56 = vshrl.u32 %v86_v52, 1  ;;  %v87_v57 = vxor.u32 %v85_v53, %v83_v51 }
  0x32   :  { %vm90_vm0 = vcmp.ge.s32.totalorder %v88_v56, 536870912  ;;  %v89_v59 = vshrl.u32 %v87_v57, 1 }
  0x33   :  { %v96_v60 = vsel %vm90_vm0, %v94_v55, 0.0 }
  0x34   :  { %98 = vst [vmem:[#allocation7] sm:$0xff] %v96_v60  ;;  %vm91_vm1 = vcmp.ge.s32.totalorder %v89_v59, 536870912 }
  0x35   :  { %v97_v61 = vsel %vm91_vm1, %v95_v58, 0.0 }
  0x36   :  { %99 = vst [vmem:[#allocation7 + $0x8] sm:$0xff] %v97_v61 }
  0x37   :  { %112 = dma.vmem_to_hbm [thread:$0]  %s105_s20, 256, %s107_s23, [#allocation6], %s176_s14, %s176_s14, %s177_s15  }
  0x38   :  { %173 = dma.done.wait [#allocation6], 256  }
  0x39   :  { %174 = vsyncadd [#allocation6], 4294967040 }
  0x3a   :  { %117 = vsyncpa [#allocation5], 1 }
  0x3b   :  { %118 = vsyncpa [#allocation6], 1 }

</bundles_post_ra>
